<compile_context>
chip_gen: v5e
topology: v5e:2x2
jax: 0.10.0
libtpu: 0.0.40
codegen_flags: <defaults>
</compile_context>

<pallas_src>
import numpy as np
import jax
import jax.numpy as jnp
from jax.experimental import pallas as pl
from jax.experimental.pallas import tpu as pltpu

NUM_TAGS = 6           # PAD=0, O=1, (B,I) x 2 entity types
NO_PAD = NUM_TAGS - 1  # 5
R = 0.4                # trade-off between backoff (source) and target transition
EPS = 1e-12            # torch.nn.functional.normalize eps
OUT_LANES = 128        # lane-dense packed output width


def build_unfold_index(no_pad):
    # TODO(synk): the provided PyTorch build_unfold_index indexes a 4x4 viewer out of bounds
    # (viewer[1,4] / viewer[2,4]); we use the canonical 3x5 backoff layout (O,B,I)x(O,B,I,B',I')
    # gathered out of the flattened 4x4 backoff parameter, exactly as torch.take would.
    sp = no_pad // 2
    viewer = np.arange(15).reshape(3, 5)
    idx = np.zeros((no_pad, no_pad), dtype=np.int32)
    idx[0, 0] = viewer[0, 0]
    for j in range(1, sp + 1):
        idx[0, 2 * j - 1] = viewer[0, 1]
        idx[0, 2 * j] = viewer[0, 2]
    for i in range(1, sp + 1):
        B, I = 2 * i - 1, 2 * i
        for j in range(1, sp + 1):
            Bo, Io = 2 * j - 1, 2 * j
            idx[B, Bo] = viewer[1, 3]
            idx[B, Io] = viewer[1, 4]
            idx[I, Bo] = viewer[2, 3]
            idx[I, Io] = viewer[2, 4]
        idx[B, 0] = viewer[1, 0]
        idx[I, 0] = viewer[2, 0]
        idx[B, B] = viewer[1, 1]
        idx[B, I] = viewer[1, 2]
        idx[I, B] = viewer[2, 1]
        idx[I, I] = viewer[2, 2]
    return idx


def build_start_end_unfold_index(no_pad):
    sp = no_pad // 2
    idx = np.zeros((no_pad,), dtype=np.int32)
    for i in range(1, sp + 1):
        idx[2 * i - 1] = 1
        idx[2 * i] = 2
    return idx


def transition_kernel(sup_ref, out_ref):
    """sup_ref: (S, L, T) one-hot f32 targets of support set 0 (batch sliced in the wrapper).
       out_ref: (ROWS, 128) packed L1-normalized target stats:
                rows 0..T-1 = target trans (T x T), row T = start, row T+1 = end, rest zero."""
    S, L, T = sup_ref.shape
    ROWS, LANES = out_ref.shape
    f32 = jnp.float32

    oh = sup_ref[...]                                           # one-hot float32 (no cast)

    # ---- PAD / validity masks, all kept in the (S, L, 1) sublane layout --------------------
    il = jax.lax.broadcasted_iota(jnp.int32, (S, L, 1), 1)      # position index along L
    # PAD is tag 0 -> lane 0 of the one-hot marks PAD; position 0 is never checked by the
    # reference break condition, so force it to "non-PAD".
    # TODO(synk): like the vectorized counting below, this assumes hard one-hot targets
    # (the PyTorch reference argmaxes, which would also tolerate soft targets).
    notpad = jnp.where(il == 0, 1.0, 1.0 - oh[:, :, 0:1])       # (S, L, 1)

    # cumulative AND along L: cum[s, l] == 1 iff positions 1..l are all non-PAD
    cum = notpad
    sh = 1
    while sh < L:                                               # log2(L) sublane-roll steps
        cum = cum * jnp.where(il < sh, 1.0, pltpu.roll(cum, shift=sh, axis=1))
        sh *= 2

    # end position: last l with cum == 1 (== first_pad - 1, or L-1 if the sentence has no PAD)
    cum_next = jnp.where(il == L - 1, 0.0, pltpu.roll(cum, shift=L - 1, axis=1))
    end_mask = cum - cum_next                                   # (S, L, 1), one-hot over L
    start_sel = (il == 0).astype(f32)                           # (S, L, 1)

    # previous-token channels: oh shifted down by one position, masked by transition validity
    prev_oh = jnp.where(il == 0, 0.0, pltpu.roll(oh, shift=1, axis=1)) * cum    # (S, L, T)

    # ---- one fused count contraction: rows 0..T-1 trans, row T start, row T+1 end ----------
    pieces = [prev_oh, start_sel, end_mask]
    if ROWS > T + 2:
        pieces.append(jnp.zeros((S, L, ROWS - (T + 2)), f32))
    lhs = jnp.concatenate(pieces, axis=-1)                      # (S, L, ROWS), minor-dim concat

    lhs_b = lhs.astype(jnp.bfloat16)                            # 0/1 values -> bf16 is exact
    rhs_b = oh.astype(jnp.bfloat16)
    counts = jnp.zeros((ROWS, T), f32)
    for s in range(S):                                          # S static & tiny: S MXU pushes
        counts = counts + jax.lax.dot_general(
            lhs_b[s], rhs_b[s], (((0,), (0,)), ((), ())),
            preferred_element_type=f32)

    # ---- L1 normalize (F.normalize p=1 semantics) -------------------------------------------
    # The PAD (tag 0) column of the trans rows is zero by construction; the reference slices
    # [1:] before normalizing start/end, so drop lane 0 for those two rows as well.
    ri = jax.lax.broadcasted_iota(jnp.int32, (ROWS, T), 0)
    ci = jax.lax.broadcasted_iota(jnp.int32, (ROWS, T), 1)
    counts = jnp.where((ri >= T) & (ci == 0), 0.0, counts)
    denom = jnp.maximum(jnp.sum(jnp.abs(counts), axis=1, keepdims=True), EPS)
    normed = counts / denom                                     # (ROWS, T)

    # single lane-dense full-block store (register-composed, one unmasked vst + one DMA)
    out_ref[...] = jnp.concatenate(
        [normed, jnp.zeros((ROWS, LANES - T), f32)], axis=-1)


def few_shot_transition_scorer(test_reps, support_target, params, r=R):
    """Mirrors FewShotTransitionScorer.forward (eval mode, 0 < r < 1).

    NOTE: the result depends only on support_target[0] and the backoff parameters, so at the
    call site this should be computed once per episode and reused across test batches."""
    del test_reps  # unused by the reference forward (left for future use)
    backoff_trans, backoff_start, backoff_end = params
    _, S, L, T = support_target.shape
    P = T - 1
    rows = max(8, -(-(T + 2) // 8) * 8)

    # Static backoff unfold (torch.take with compile-time indices): a cheap XLA gather that
    # fuses with the final lerp; it never enters the kernel.
    unfold_idx = build_unfold_index(P)
    se_idx = build_start_end_unfold_index(P)
    bt_flat = backoff_trans.reshape(-1).astype(jnp.float32)
    src_trans = bt_flat[unfold_idx]                              # (P, P)
    src_start = backoff_start.astype(jnp.float32)[se_idx]        # (P,)
    src_end = backoff_end.astype(jnp.float32)[se_idx]            # (P,)

    # All test examples share the same support set -> slice batch 0 in the wrapper.
    sup0 = support_target[0]
    if sup0.dtype != jnp.float32:                                # no-op for the usual f32 one-hot
        sup0 = sup0.astype(jnp.float32)

    packed = pl.pallas_call(
        transition_kernel,
        out_shape=jax.ShapeDtypeStruct((rows, OUT_LANES), jnp.float32),
        in_specs=[pl.BlockSpec(memory_space=pltpu.MemorySpace.VMEM)],
        out_specs=pl.BlockSpec(memory_space=pltpu.MemorySpace.VMEM),
    )(sup0)

    tgt_trans = packed[1:T, 1:T]                                 # (P, P)
    tgt_start = packed[T, 1:T]                                   # (P,)
    tgt_end = packed[T + 1, 1:T]                                 # (P,)

    trans = r * src_trans + (1.0 - r) * tgt_trans
    start = r * src_start + (1.0 - r) * tgt_start
    end = r * src_end + (1.0 - r) * tgt_end
    return trans, start, end


def reference_forward(support_target, bt44, bs4, be4, r):
    """Pure-numpy port of the PyTorch forward for verification."""
    T = support_target.shape[-1]
    P = T - 1
    unfold_idx = build_unfold_index(P)
    se_idx = build_start_end_unfold_index(P)
    bt_flat = bt44.reshape(-1)
    src_trans = bt_flat[unfold_idx]
    src_start = bs4[se_idx]
    src_end = be4[se_idx]

    targets = support_target[0]
    trans = np.zeros((T, T), np.float32)
    start = np.zeros((T,), np.float32)
    end = np.zeros((T,), np.float32)
    for tgt in targets:
        ids = np.argmax(tgt, axis=-1)
        end_idx = -1
        for i in range(len(ids) - 1):
            cur, nxt = ids[i], ids[i + 1]
            if nxt == 0:
                end_idx = i
                break
            trans[cur, nxt] += 1.0
        start[ids[0]] += 1.0
        end[ids[end_idx]] += 1.0

    def l1norm(x, axis):
        n = np.sum(np.abs(x), axis=axis, keepdims=True)
        return x / np.maximum(n, EPS)

    tgt_trans = l1norm(trans[1:, 1:], 1)
    tgt_start = l1norm(start[1:], 0)
    tgt_end = l1norm(end[1:], 0)
    return (r * src_trans + (1 - r) * tgt_trans,
            r * src_start + (1 - r) * tgt_start,
            r * src_end + (1 - r) * tgt_end)


if __name__ == "__main__":
    key = jax.random.PRNGKey(0)
    k1, k2, k3, k4, k5, k6 = jax.random.split(key, 6)
    B, S, L, T = 2, 4, 8, NUM_TAGS

    # Deterministic synthetic parameters mirroring __init__ (backoff_init='rand'):
    # xavier_normal_ on (4,4) has std sqrt(2/(4+4)) = 0.5; start/end are 0.5*randn(4).
    backoff_trans = 0.5 * jax.random.normal(k1, (4, 4), jnp.float32)
    backoff_start = 0.5 * jax.random.normal(k2, (4,), jnp.float32)
    backoff_end = 0.5 * jax.random.normal(k3, (4,), jnp.float32)

    # support targets: one-hot (B, S, L, T); label ids in [1, T), PAD=0 suffix
    labels = jax.random.randint(k4, (B, S, L), 1, T)
    lengths = jax.random.randint(k5, (B, S), 3, L + 1)
    pos = jnp.arange(L)[None, None, :]
    ids = jnp.where(pos < lengths[:, :, None], labels, 0)
    support_target = jax.nn.one_hot(ids, T, dtype=jnp.float32)

    test_reps = jax.random.normal(k6, (B, 8, 32), jnp.float32)  # unused, kept for signature parity

    trans, start, end = few_shot_transition_scorer(
        test_reps, support_target, (backoff_trans, backoff_start, backoff_end), r=R)
    jax.block_until_ready((trans, start, end))

    ref_trans, ref_start, ref_end = reference_forward(
        np.asarray(support_target), np.asarray(backoff_trans),
        np.asarray(backoff_start), np.asarray(backoff_end), R)
    np.testing.assert_allclose(np.asarray(trans), ref_trans, rtol=1e-5, atol=1e-5)
    np.testing.assert_allclose(np.asarray(start), ref_start, rtol=1e-5, atol=1e-5)
    np.testing.assert_allclose(np.asarray(end), ref_end, rtol=1e-5, atol=1e-5)
    print("KERNEL_OK")
</pallas_src>

<mosaic_0001>
module attributes {stable_mosaic.version = 11 : i64} {
  func.func @transition_kernel(%arg0: memref<4x8x6xf32, #tpu.memory_space<vmem>>, %arg1: memref<8x128xf32, #tpu.memory_space<vmem>>) attributes {dimension_semantics = [], scalar_prefetch = 0 : i64, scratch_operands = 0 : i64, tpu.core_type = #tpu.core_type<tc>} {
    %c0 = arith.constant 0 : index
    %c0_0 = arith.constant 0 : index
    %c0_1 = arith.constant 0 : index
    %0 = vector.load %arg0[%c0, %c0_0, %c0_1] : memref<4x8x6xf32, #tpu.memory_space<vmem>>, vector<4x8x6xf32>
    %1 = tpu.iota {dimensions = array<i32: 1>} : vector<4x8x1xi32>
    %c0_i32 = arith.constant 0 : i32
    %2 = vector.broadcast %c0_i32 : i32 to vector<4x8x1xi32>
    %3 = arith.cmpi eq, %1, %2 : vector<4x8x1xi32>
    %4 = vector.extract_strided_slice %0 {offsets = [0, 0, 0], sizes = [4, 8, 1], strides = [1, 1, 1]} : vector<4x8x6xf32> to vector<4x8x1xf32>
    %cst = arith.constant 1.000000e+00 : f32
    %5 = vector.broadcast %cst : f32 to vector<4x8x1xf32>
    %6 = arith.subf %5, %4 : vector<4x8x1xf32>
    %cst_2 = arith.constant 1.000000e+00 : f32
    %7 = vector.broadcast %cst_2 : f32 to vector<4x8x1xf32>
    %8 = arith.select %3, %7, %6 : vector<4x8x1xi1>, vector<4x8x1xf32>
    %c1_i32 = arith.constant 1 : i32
    %9 = vector.broadcast %c1_i32 : i32 to vector<4x8x1xi32>
    %10 = arith.cmpi slt, %1, %9 : vector<4x8x1xi32>
    %c1_i32_3 = arith.constant 1 : i32
    %11 = tpu.dynamic_rotate %8 by %c1_i32_3 dim 1 : vector<4x8x1xf32>, i32 -> vector<4x8x1xf32>
    %cst_4 = arith.constant 1.000000e+00 : f32
    %12 = vector.broadcast %cst_4 : f32 to vector<4x8x1xf32>
    %13 = arith.select %10, %12, %11 : vector<4x8x1xi1>, vector<4x8x1xf32>
    %14 = arith.mulf %8, %13 : vector<4x8x1xf32>
    %c2_i32 = arith.constant 2 : i32
    %15 = vector.broadcast %c2_i32 : i32 to vector<4x8x1xi32>
    %16 = arith.cmpi slt, %1, %15 : vector<4x8x1xi32>
    %c2_i32_5 = arith.constant 2 : i32
    %17 = tpu.dynamic_rotate %14 by %c2_i32_5 dim 1 : vector<4x8x1xf32>, i32 -> vector<4x8x1xf32>
    %cst_6 = arith.constant 1.000000e+00 : f32
    %18 = vector.broadcast %cst_6 : f32 to vector<4x8x1xf32>
    %19 = arith.select %16, %18, %17 : vector<4x8x1xi1>, vector<4x8x1xf32>
    %20 = arith.mulf %14, %19 : vector<4x8x1xf32>
    %c4_i32 = arith.constant 4 : i32
    %21 = vector.broadcast %c4_i32 : i32 to vector<4x8x1xi32>
    %22 = arith.cmpi slt, %1, %21 : vector<4x8x1xi32>
    %c4_i32_7 = arith.constant 4 : i32
    %23 = tpu.dynamic_rotate %20 by %c4_i32_7 dim 1 : vector<4x8x1xf32>, i32 -> vector<4x8x1xf32>
    %cst_8 = arith.constant 1.000000e+00 : f32
    %24 = vector.broadcast %cst_8 : f32 to vector<4x8x1xf32>
    %25 = arith.select %22, %24, %23 : vector<4x8x1xi1>, vector<4x8x1xf32>
    %26 = arith.mulf %20, %25 : vector<4x8x1xf32>
    %c7_i32 = arith.constant 7 : i32
    %27 = vector.broadcast %c7_i32 : i32 to vector<4x8x1xi32>
    %28 = arith.cmpi eq, %1, %27 : vector<4x8x1xi32>
    %c7_i32_9 = arith.constant 7 : i32
    %29 = tpu.dynamic_rotate %26 by %c7_i32_9 dim 1 : vector<4x8x1xf32>, i32 -> vector<4x8x1xf32>
    %cst_10 = arith.constant 0.000000e+00 : f32
    %30 = vector.broadcast %cst_10 : f32 to vector<4x8x1xf32>
    %31 = arith.select %28, %30, %29 : vector<4x8x1xi1>, vector<4x8x1xf32>
    %32 = arith.subf %26, %31 : vector<4x8x1xf32>
    %c0_i32_11 = arith.constant 0 : i32
    %33 = vector.broadcast %c0_i32_11 : i32 to vector<4x8x1xi32>
    %34 = arith.cmpi eq, %1, %33 : vector<4x8x1xi32>
    %35 = arith.extui %34 : vector<4x8x1xi1> to vector<4x8x1xi32>
    %36 = arith.sitofp %35 : vector<4x8x1xi32> to vector<4x8x1xf32>
    %c0_i32_12 = arith.constant 0 : i32
    %37 = vector.broadcast %c0_i32_12 : i32 to vector<4x8x1xi32>
    %38 = arith.cmpi eq, %1, %37 : vector<4x8x1xi32>
    %c1_i32_13 = arith.constant 1 : i32
    %39 = tpu.dynamic_rotate %0 by %c1_i32_13 dim 1 : vector<4x8x6xf32>, i32 -> vector<4x8x6xf32>
    %cst_14 = arith.constant 0.000000e+00 : f32
    %40 = vector.shape_cast %38 : vector<4x8x1xi1> to vector<4x8x1xi1>
    %41 = vector.broadcast %40 : vector<4x8x1xi1> to vector<4x8x6xi1>
    %42 = vector.broadcast %cst_14 : f32 to vector<4x8x6xf32>
    %43 = arith.select %41, %42, %39 : vector<4x8x6xi1>, vector<4x8x6xf32>
    %44 = vector.broadcast %26 : vector<4x8x1xf32> to vector<4x8x6xf32>
    %45 = arith.mulf %43, %44 : vector<4x8x6xf32>
    %46 = tpu.concatenate %45, %36, %32 in 2 : vector<4x8x6xf32>, vector<4x8x1xf32>, vector<4x8x1xf32> -> vector<4x8x8xf32>
    %47 = arith.truncf %46 : vector<4x8x8xf32> to vector<4x8x8xbf16>
    %48 = arith.truncf %0 : vector<4x8x6xf32> to vector<4x8x6xbf16>
    %cst_15 = arith.constant 0.000000e+00 : f32
    %49 = vector.broadcast %cst_15 : f32 to vector<8x6xf32>
    %50 = vector.extract_strided_slice %47 {offsets = [0, 0, 0], sizes = [1, 8, 8], strides = [1, 1, 1]} : vector<4x8x8xbf16> to vector<1x8x8xbf16>
    %51 = vector.shape_cast %50 : vector<1x8x8xbf16> to vector<8x8xbf16>
    %52 = vector.extract_strided_slice %48 {offsets = [0, 0, 0], sizes = [1, 8, 6], strides = [1, 1, 1]} : vector<4x8x6xbf16> to vector<1x8x6xbf16>
    %53 = vector.shape_cast %52 : vector<1x8x6xbf16> to vector<8x6xbf16>
    %cst_16 = arith.constant dense<0.000000e+00> : vector<8x6xf32>
    %54 = tpu.matmul %51, %53, %cst_16 {dimension_numbers = #tpu.dot_dimension_numbers<[0], [0], [1], [1], [0, 1, 1, 1], [], []>} : vector<8x8xbf16>, vector<8x6xbf16>, vector<8x6xf32> -> vector<8x6xf32>
    %55 = arith.addf %49, %54 : vector<8x6xf32>
    %56 = vector.extract_strided_slice %47 {offsets = [1, 0, 0], sizes = [1, 8, 8], strides = [1, 1, 1]} : vector<4x8x8xbf16> to vector<1x8x8xbf16>
    %57 = vector.shape_cast %56 : vector<1x8x8xbf16> to vector<8x8xbf16>
    %58 = vector.extract_strided_slice %48 {offsets = [1, 0, 0], sizes = [1, 8, 6], strides = [1, 1, 1]} : vector<4x8x6xbf16> to vector<1x8x6xbf16>
    %59 = vector.shape_cast %58 : vector<1x8x6xbf16> to vector<8x6xbf16>
    %cst_17 = arith.constant dense<0.000000e+00> : vector<8x6xf32>
    %60 = tpu.matmul %57, %59, %cst_17 {dimension_numbers = #tpu.dot_dimension_numbers<[0], [0], [1], [1], [0, 1, 1, 1], [], []>} : vector<8x8xbf16>, vector<8x6xbf16>, vector<8x6xf32> -> vector<8x6xf32>
    %61 = arith.addf %55, %60 : vector<8x6xf32>
    %62 = vector.extract_strided_slice %47 {offsets = [2, 0, 0], sizes = [1, 8, 8], strides = [1, 1, 1]} : vector<4x8x8xbf16> to vector<1x8x8xbf16>
    %63 = vector.shape_cast %62 : vector<1x8x8xbf16> to vector<8x8xbf16>
    %64 = vector.extract_strided_slice %48 {offsets = [2, 0, 0], sizes = [1, 8, 6], strides = [1, 1, 1]} : vector<4x8x6xbf16> to vector<1x8x6xbf16>
    %65 = vector.shape_cast %64 : vector<1x8x6xbf16> to vector<8x6xbf16>
    %cst_18 = arith.constant dense<0.000000e+00> : vector<8x6xf32>
    %66 = tpu.matmul %63, %65, %cst_18 {dimension_numbers = #tpu.dot_dimension_numbers<[0], [0], [1], [1], [0, 1, 1, 1], [], []>} : vector<8x8xbf16>, vector<8x6xbf16>, vector<8x6xf32> -> vector<8x6xf32>
    %67 = arith.addf %61, %66 : vector<8x6xf32>
    %68 = vector.extract_strided_slice %47 {offsets = [3, 0, 0], sizes = [1, 8, 8], strides = [1, 1, 1]} : vector<4x8x8xbf16> to vector<1x8x8xbf16>
    %69 = vector.shape_cast %68 : vector<1x8x8xbf16> to vector<8x8xbf16>
    %70 = vector.extract_strided_slice %48 {offsets = [3, 0, 0], sizes = [1, 8, 6], strides = [1, 1, 1]} : vector<4x8x6xbf16> to vector<1x8x6xbf16>
    %71 = vector.shape_cast %70 : vector<1x8x6xbf16> to vector<8x6xbf16>
    %cst_19 = arith.constant dense<0.000000e+00> : vector<8x6xf32>
    %72 = tpu.matmul %69, %71, %cst_19 {dimension_numbers = #tpu.dot_dimension_numbers<[0], [0], [1], [1], [0, 1, 1, 1], [], []>} : vector<8x8xbf16>, vector<8x6xbf16>, vector<8x6xf32> -> vector<8x6xf32>
    %73 = arith.addf %67, %72 : vector<8x6xf32>
    %74 = tpu.iota {dimensions = array<i32: 0>} : vector<8x6xi32>
    %75 = tpu.iota {dimensions = array<i32: 1>} : vector<8x6xi32>
    %c6_i32 = arith.constant 6 : i32
    %76 = vector.broadcast %c6_i32 : i32 to vector<8x6xi32>
    %77 = arith.cmpi sge, %74, %76 : vector<8x6xi32>
    %c0_i32_20 = arith.constant 0 : i32
    %78 = vector.broadcast %c0_i32_20 : i32 to vector<8x6xi32>
    %79 = arith.cmpi eq, %75, %78 : vector<8x6xi32>
    %80 = arith.andi %77, %79 : vector<8x6xi1>
    %cst_21 = arith.constant 0.000000e+00 : f32
    %81 = vector.broadcast %cst_21 : f32 to vector<8x6xf32>
    %82 = arith.select %80, %81, %73 : vector<8x6xi1>, vector<8x6xf32>
    %83 = math.absf %82 : vector<8x6xf32>
    %cst_22 = arith.constant dense<0.000000e+00> : vector<8xf32>
    %84 = vector.multi_reduction <add>, %83, %cst_22 [1] : vector<8x6xf32> to vector<8xf32>
    %85 = vector.shape_cast %84 : vector<8xf32> to vector<8x1xf32>
    %cst_23 = arith.constant 9.99999996E-13 : f32
    %86 = vector.broadcast %cst_23 : f32 to vector<8x1xf32>
    %87 = arith.maximumf %85, %86 : vector<8x1xf32>
    %88 = vector.broadcast %87 : vector<8x1xf32> to vector<8x6xf32>
    %89 = arith.divf %82, %88 : vector<8x6xf32>
    %cst_24 = arith.constant 0.000000e+00 : f32
    %90 = vector.broadcast %cst_24 : f32 to vector<8x122xf32>
    %91 = tpu.concatenate %89, %90 in 1 : vector<8x6xf32>, vector<8x122xf32> -> vector<8x128xf32>
    %c0_25 = arith.constant 0 : index
    %c0_26 = arith.constant 0 : index
    %92 = vector.load %arg1[%c0_25, %c0_26] : memref<8x128xf32, #tpu.memory_space<vmem>>, vector<8x128xf32>
    tpu.vector_store %arg1[%c0_25, %c0_26], %91 {strides = array<i32>} : memref<8x128xf32, #tpu.memory_space<vmem>>, vector<8x128xf32>,
    return
  }
}

</mosaic_0001>

<bundles_post_ra>
// kernel: tpu_custom_call.1
= control target key start
LH: loop header
LB: loop body
LE: loop exit
PB: predicated region body
PF: predicated region fallthrough
CT: control target
= control target key end

     0   :  { %v14_v1 = vlaneseq  ;;  %v390_v4 = vmov 0   ;;  %s485_s0 = inlined_call_operand.vmem [shape: f32[4,8,6], index: 0, kind: input, shape index: {}]   ;;  %s486_s1 = inlined_call_operand.hbm [shape: f32[8,128], index: 1, kind: output, shape index: {}]  }
   0x1   :  { %v407_v0 = vld [vmem:[%s485_s0 + $0x10] sm:$0xff]  ;;  %v412_v2 = vld [vmem:[%s485_s0] sm:$0xff]  ;;  %v417_v3 = vld [vmem:[%s485_s0 + $0x18] sm:$0xff]  ;;  %344 = vset.pattern.permute.xlu1 %v390_v4  ;;  %343 = vset.pattern.permute.xlu0 %v390_v4 }
   0x2   :  { %v19_v5 = vsub.f32 1.0, %v407_v0  ;;  %v17_v6 = vsub.f32 1.0, %v412_v2  ;;  %v20_v7 = vsub.f32 1.0, %v417_v3  ;;  %v425_v8 = vld [vmem:[%s485_s0 + $0x8] sm:$0xff]  ;;  %v428_v9 = vshrl.u32 %v14_v1, 7  ;;  %345 = vset.pattern.permute.xlu2 %v390_v4 }
   0x3   :  { %v18_v10 = vsub.f32 1.0, %v425_v8 }
   0x4   :  { %6 = vsyncpa [#allocation3], 0  ;;  %vm16_vm0 = vcmp.eq.s32.totalorder %v428_v9, 0  ;;  %vm25_vm1 = vcmp.lt.s32.totalorder %v428_v9, 1  ;;  %vm38_vm2 = vcmp.lt.s32.totalorder %v428_v9, 2  ;;  %vm51_vm3 = vcmp.lt.s32.totalorder %v428_v9, 4 }
   0x5   :  { %v23_v11 = vsel %vm16_vm0, 1.0, %v19_v5  ;;  %v21_v12 = vsel %vm16_vm0, 1.0, %v17_v6  ;;  %v24_v13 = vsel %vm16_vm0, 1.0, %v20_v7  ;;  %v22_v17 = vsel %vm16_vm0, 1.0, %v18_v10  ;;  %s391_s0 = smov 7   ;;  %s393_s14 = smov [#allocation2]  }
   0x6   :  { %v28_v14 = vrot.slane %v23_v11, 7  ;;  %v26_v15 = vrot.slane %v21_v12, 7  ;;  %v29_v16 = vrot.slane %v24_v13, 7  ;;  %v27_v18 = vrot.slane %v22_v17, 7  ;;  %s323_s15 = sshll.u32 %s393_s14, 4  ;;  %s325_s18 = sshll.u32 %s486_s1, 4  ;;  %s324_s15 = int_to_ptr.vmem [resolvable:$true] %s323_s15  ;;  %s326_s18 = int_to_ptr.hbm [resolvable:$true] %s325_s18 }
   0x7   :  { %vm64_vm4 = vcmp.eq.s32.totalorder %v428_v9, 7  ;;  %v143_v6 = vpack.c.bf16 %v425_v8, %v425_v8  ;;  %vm166_vm5 = vcmask 1043456   ;;  %v80_v10 = vrot.slane %v425_v8, 7 }
   0x8   :  { %v32_v19 = vsel %vm25_vm1, 1.0, %v28_v14  ;;  %v30_v20 = vsel %vm25_vm1, 1.0, %v26_v15  ;;  %v33_v21 = vsel %vm25_vm1, 1.0, %v29_v16  ;;  %v31_v25 = vsel %vm25_vm1, 1.0, %v27_v18 }
   0x9   :  { %v36_v22 = vmul.f32 %v32_v19, %v23_v11  ;;  %v34_v23 = vmul.f32 %v30_v20, %v21_v12  ;;  %v37_v24 = vmul.f32 %v33_v21, %v24_v13  ;;  %v35_v26 = vmul.f32 %v31_v25, %v22_v17 }
   0xa   :  { %v168_v7 = vsel %vm166_vm5, %v143_v6, 0  ;;  %v85_v11 = vsel %vm16_vm0, 0.0, %v80_v10  ;;  %v392_v14 = vmov 0.0   ;;  %vm128_vm6 = vcmask 48128  }
   0xb   :  { %v41_v27 = vrot.slane %v36_v22, 6  ;;  %v39_v28 = vrot.slane %v34_v23, 6  ;;  %v42_v29 = vrot.slane %v37_v24, 6  ;;  %v40_v30 = vrot.slane %v35_v26, 6  ;;  %177 = vmatpush.bf16.msra.mxu0 %v168_v7 }
   0xc   :  { %v334_v15 = vsel %vm16_vm0, 1.0, %v392_v14  ;;  %v79_v16 = vrot.slane %v412_v2, 7  ;;  %vm133_vm7 = vcmask 56320   ;;  %v81_v19 = vrot.slane %v407_v0, 7 }
   0xd   :  { %v45_v31 = vsel %vm38_vm2, 1.0, %v41_v27  ;;  %v43_v32 = vsel %vm38_vm2, 1.0, %v39_v28  ;;  %v46_v33 = vsel %vm38_vm2, 1.0, %v42_v29  ;;  %v44_v37 = vsel %vm38_vm2, 1.0, %v40_v30 }
   0xe   :  { %v49_v34 = vmul.f32 %v45_v31, %v36_v22  ;;  %v47_v35 = vmul.f32 %v43_v32, %v34_v23  ;;  %v50_v36 = vmul.f32 %v46_v33, %v37_v24  ;;  %v48_v38 = vmul.f32 %v44_v37, %v35_v26 }
   0xf   :  { %v84_v8 = vsel %vm16_vm0, 0.0, %v79_v16  ;;  %v82_v25 = vrot.slane %v417_v3, 7  ;;  %v86_v26 = vsel %vm16_vm0, 0.0, %v81_v19  ;;  %vm162_vm8 = vcmask 64512  }
  0x10   :  { %v54_v39 = vrot.slane %v49_v34, 4  ;;  %v52_v40 = vrot.slane %v47_v35, 4  ;;  %v55_v41 = vrot.slane %v50_v36, 4  ;;  %v53_v42 = vrot.slane %v48_v38, 4 }
  0x11   :  { %v87_v32 = vsel %vm16_vm0, 0.0, %v82_v25  ;;  %vm292_vm9 = vcmp.ge.s32.totalorder %v428_v9, 6 }
  0x12   :  { %v58_v43 = vsel %vm51_vm3, 1.0, %v54_v39  ;;  %v56_v44 = vsel %vm51_vm3, 1.0, %v52_v40  ;;  %v59_v45 = vsel %vm51_vm3, 1.0, %v55_v41  ;;  %v57_v49 = vsel %vm51_vm3, 1.0, %v53_v42 }
  0x13   :  { %v62_v46 = vmul.f32 %v58_v43, %v49_v34  ;;  %v60_v47 = vmul.f32 %v56_v44, %v47_v35  ;;  %v63_v48 = vmul.f32 %v59_v45, %v50_v36  ;;  %v61_v50 = vmul.f32 %v57_v49, %v48_v38 }
  0x14   :  { %v144_v44 = vpack.c.bf16 %v407_v0, %v407_v0  ;;  %v142_v45 = vpack.c.bf16 %v412_v2, %v412_v2 }
  0x15   :  { %100 = vperm.xlu0 %343, %v62_v46   ;;  %v67_v51 = vrot.slane %v62_v46, 1  ;;  %90 = vperm.xlu1 %344, %v60_v47   ;;  %v65_v52 = vrot.slane %v60_v47, 1  ;;  %v68_v53 = vrot.slane %v63_v48, 1  ;;  %v66_v54 = vrot.slane %v61_v50, 1 }
  0x16   :  { %95 = vperm.xlu2 %345, %v61_v50  }
  0x17   :  { %v71_v55 = vsel %vm64_vm4, 0.0, %v67_v51  ;;  %v72_v56 = vsel %vm64_vm4, 0.0, %v68_v53  ;;  %v69_v57 = vsel %vm64_vm4, 0.0, %v65_v52  ;;  %v70_v60 = vsel %vm64_vm4, 0.0, %v66_v54 }
  0x18   :  { %v75_v58 = vsub.f32 %v62_v46, %v71_v55  ;;  %v76_v59 = vsub.f32 %v63_v48, %v72_v56  ;;  %v73_v61 = vsub.f32 %v60_v47, %v69_v57  ;;  %v74_v62 = vsub.f32 %v61_v50, %v70_v60 }
  0x19   :  { %v238_v46 = vsel %vm166_vm5, %v144_v44, 0  ;;  %v203_v47 = vsel %vm166_vm5, %v142_v45, 0  ;;  %v291_v56 = vand.u32 127, %v14_v1 }
  0x1a   :  { %v346_v63 = vpack.i.bf16 %v76_v59, %v75_v58  ;;  %v351_v4 = vpack.i.bf16 %v74_v62, %v73_v61  ;;  %247 = vmatpush.bf16.msra.mxu2 %v238_v46  ;;  %212 = vmatpush.bf16.msra.mxu1 %v203_v47 }
  0x1b   :  { %vm293_vm10 = vcmp.eq.s32.totalorder %v291_v56, 0 }
  0x1c   :  { %vm294_vm11 = vmand %vm292_vm9, %vm293_vm10 }
  0x1d   :  { %105 = vperm.xlu0 %343, %v63_v48   ;;  %347 = vrot.lane.b32.xlu1 %v346_v63, %s391_s0  ;;  %v145_v48 = vpack.c.bf16 %v417_v3, %v417_v3 }
  0x1e   :  { %352 = vrot.lane.b32.xlu2 %v351_v4, %s391_s0 }
  0x1f   :  { %v274_v49 = vsel %vm166_vm5, %v145_v48, 0 }
  0x20   :  { %283 = vmatpush.bf16.msra.mxu3 %v274_v49 }
  0x70   :  { %v96_v5 = vpop.permute.xlu2 %95 }
  0x71   :  { %v109_v12 = vmul.f32 %v96_v5, %v85_v11 }
  0x73   :  { %v130_v18 = vsel %vm128_vm6, %v109_v12, %v334_v15 }
  0x78   :  { %v353_v13 = vpop.permute.xlu2 %352 }
  0x79   :  { %v355_v17 = vunpack.i.h.bf16 %v353_v13  ;;  %v354_v23 = vunpack.i.l.bf16 %v353_v13 }
  0x7b   :  { %v135_v22 = vsel %vm133_vm7, %v130_v18, %v355_v17 }
  0x7c   :  { %v139_v28 = vpack.c.bf16 %v135_v22, %v135_v22 }
  0x87   :  { %v101_v20 = vpop.permute.xlu0 %100  ;;  %v91_v21 = vpop.permute.xlu1 %90 }
  0x88   :  { %v108_v24 = vmul.f32 %v91_v21, %v84_v8  ;;  %v110_v31 = vmul.f32 %v101_v20, %v86_v26 }
  0x8a   :  { %v129_v27 = vsel %vm128_vm6, %v108_v24, %v334_v15  ;;  %v131_v38 = vsel %vm128_vm6, %v110_v31, %v334_v15 }
  0x8b   :  { %v134_v29 = vsel %vm133_vm7, %v129_v27, %v354_v23 }
  0x8c   :  { %v138_v30 = vpack.c.bf16 %v134_v29, %v134_v29 }
  0x8e   :  { %359 = vxpose.binary.xlu1.c.b16.start.end [1/2] (short) (narrow) %v138_v30, %v139_v28, 16 }
  0x8f   :  { %v106_v33 = vpop.permute.xlu0 %105  ;;  %v348_v34 = vpop.permute.xlu1 %347 }
  0x90   :  { %v111_v35 = vmul.f32 %v106_v33, %v87_v32  ;;  %v350_v36 = vunpack.i.h.bf16 %v348_v34  ;;  %v349_v37 = vunpack.i.l.bf16 %v348_v34 }
  0x92   :  { %v132_v39 = vsel %vm128_vm6, %v111_v35, %v334_v15  ;;  %v136_v40 = vsel %vm133_vm7, %v131_v38, %v349_v37 }
  0x93   :  { %v137_v41 = vsel %vm133_vm7, %v132_v39, %v350_v36  ;;  %v140_v42 = vpack.c.bf16 %v136_v40, %v136_v40 }
  0x94   :  { %v141_v43 = vpack.c.bf16 %v137_v41, %v137_v41 }
  0x96   :  { %356 = vxpose.binary.xlu0.c.b16.start.end [1/2] (short) (narrow) %v141_v43, %v140_v42, 16 }
 0x13a   :  { %v360_v50 = vpop.trf.xlu1 }
 0x13b   :  { %335 = vmatmul.msk.bf16.vlgmr.msra.gmra.mxu0 %vm162_vm8, %v360_v50 }
 0x142   :  { %v357_v51 = vpop.trf.xlu0  ;;  %v361_v0 = vpop.trf.xlu1 }
 0x143   :  { %337 = vmatmul.msk.bf16.vlgmr.msra.gmra.mxu2 %vm162_vm8, %v357_v51  ;;  %336 = vmatmul.msk.bf16.vlgmr.msra.gmra.mxu1 %vm162_vm8, %v361_v0 }
 0x14a   :  { %v358_v2 = vpop.trf.xlu0 }
 0x14b   :  { %338 = vmatmul.msk.bf16.vlgmr.msra.gmra.mxu3 %vm162_vm8, %v358_v2 }
 0x1b8   :  { %v179_v52 = vpop.f32.mrf.mxu0 }
 0x1c0   :  { %v181_v53 = vpop.f32.mrf.mxu0  ;;  %v214_v54 = vpop.f32.mrf.mxu1 }
 0x1c1   :  { %v215_v3 = vadd.f32 %v214_v54, %v179_v52 }
 0x1c6   :  { %v249_v55 = vpop.f32.mrf.mxu2 }
 0x1c7   :  { %v253_v58 = vadd.f32 %v249_v55, %v215_v3 }
 0x1c8   :  { %v216_v57 = vpop.f32.mrf.mxu1 }
 0x1ce   :  { %v251_v59 = vpop.f32.mrf.mxu2  ;;  %v285_v60 = vpop.f32.mrf.mxu3 }
 0x1cf   :  { %v289_v61 = vadd.f32 %v285_v60, %v253_v58 }
 0x1d1   :  { %v295_v62 = vsel %vm294_vm11, 0.0, %v289_v61 }
 0x1d2   :  { %v296_v63 = vand.u32 2147483647, %v295_v62 }
 0x1d4   :  { %v297_v4 = vsel %vm128_vm6, %v296_v63, 0.0 }
 0x1d5   :  { %298 = vadd.xlane.f32.xlu2 %v297_v4 }
 0x1d6   :  { %v287_v5 = vpop.f32.mrf.mxu3 }
 0x248   :  { %v299_v6 = vpop.xlane.xlu2 %298 }
 0x249   :  { %v300_v7 = vmax.f32 %v299_v6, 1e-12 }
 0x24b   :  { %362 = vrcp.f32 %v300_v7  ;;  %v312_v12 = vand.u32 2147483648, %v300_v7  ;;  %v310_v13 = vand.u32 2147483647, %v300_v7  ;;  %vm306_vm13 = vweird.f32 %v300_v7 }
 0x24d   :  { %v313_v15 = vor.u32 1.1754944e-38, %v312_v12  ;;  %vm311_vm15 = vcmp.eq.f32.partialorder %v310_v13, 8.507059e+37 }
 0x251   :  { %v363_v1 = vpop.eup %362 }
 0x252   :  { %v302_v10 = vmul.f32 %v363_v1, %v300_v7  ;;  %vm307_vm12 = vweird.f32 %v363_v1 }
 0x253   :  { %vm308_vm14 = vmor %vm306_vm13, %vm307_vm12 }
 0x254   :  { %v303_v11 = vsub.f32 1.0, %v302_v10 }
 0x256   :  { %v304_v9 = vmul.f32 %v363_v1, %v303_v11 }
 0x258   :  { %v305_v14 = vadd.f32 %v363_v1, %v304_v9 }
 0x25a   :  { %v309_v16 = vsel %vm308_vm14, %v363_v1, %v305_v14 }
 0x25b   :  { %v314_v17 = vsel %vm311_vm15, %v313_v15, %v309_v16 }
 0x25c   :  { %v315_v18 = vmul.f32 %v314_v17, %v295_v62 }
 0x25e   :  { %v316_v8 = vsel %vm128_vm6, %v315_v18, 0.0 }
 0x25f   :  { %317 = vst [vmem:[#allocation2] sm:$0xff] %v316_v8 }
 0x260   :  { %328 = dma.vmem_to_hbm [thread:$0]  %s324_s15, 128, %s326_s18, [#allocation3]  }
 0x261   :  { %388 = dma.done.wait [#allocation3], 128  }
 0x262   :  { %389 = vsyncadd [#allocation3], 4294967168 }
 0x263   :  { %333 = vsyncpa [#allocation3], 1 }

</bundles_post_ra>
